<compile_context>
chip_gen: v7x
topology: tpu7x:2x2x1
jax: 0.10.0
libtpu: 0.0.40
codegen_flags: <defaults>
</compile_context>

<pallas_src>
import jax
import jax.numpy as jnp
from jax.experimental import pallas as pl
from jax.experimental.pallas import tpu as pltpu

_LANE = 128      # last-dim (lane) tiling unit
_SUBLANE = 8     # second-to-last (sublane) tiling unit for f32


def _round_up(x, m):
    return ((x + m - 1) // m) * m


# ---------------------------------------------------------------------------
# Kernels
# ---------------------------------------------------------------------------
def _adapter_kernel(x_ref, w1_ref, w2_ref, o_ref):
    """relu(relu(x @ W1) @ W2) with both weights resident in VMEM."""
    # x_ref: (tB, Cp), w1_ref: (Cp, Hp), w2_ref: (Hp, Cp), o_ref: (tB, Cp)
    x = x_ref[...].astype(w1_ref.dtype)        # bf16 weights -> bf16 MXU operands
    h = jnp.maximum(
        jnp.dot(x, w1_ref[...], preferred_element_type=jnp.float32), 0.0)
    y = jnp.maximum(
        jnp.dot(h.astype(w2_ref.dtype), w2_ref[...],
                preferred_element_type=jnp.float32), 0.0)
    o_ref[...] = y.astype(o_ref.dtype)


def _adapter_kernel_htiled(x_ref, w1_ref, w2_ref, o_ref, acc_ref):
    """Hidden-dim-tiled variant for weights too large to keep fully resident.

    Grid axis 1 walks hidden tiles: W1 is N-tiled (ReLU is elementwise over h,
    so tiling its columns is exact) and W2 is K-tiled and accumulated into an
    f32 VMEM scratch; the final ReLU + store happen on the last hidden step.
    """
    k = pl.program_id(1)

    @pl.when(k == 0)
    def _():
        acc_ref[...] = jnp.zeros_like(acc_ref)

    x = x_ref[...].astype(w1_ref.dtype)
    h = jnp.maximum(
        jnp.dot(x, w1_ref[...], preferred_element_type=jnp.float32), 0.0)
    acc_ref[...] += jnp.dot(h.astype(w2_ref.dtype), w2_ref[...],
                            preferred_element_type=jnp.float32)

    @pl.when(k == pl.num_programs(1) - 1)
    def _():
        o_ref[...] = jnp.maximum(acc_ref[...], 0.0).astype(o_ref.dtype)


# ---------------------------------------------------------------------------
# Tiling / VMEM budgeting
# ---------------------------------------------------------------------------
def _vmem_limits(vmem_budget_bytes=None):
    """Generation-aware (budget, limit) in bytes."""
    if vmem_budget_bytes is not None:
        return int(vmem_budget_bytes), int(vmem_budget_bytes) + 8 * 2**20
    try:
        cap = int(pltpu.get_tpu_info().vmem_capacity_bytes)
    except Exception:
        cap = 64 * 2**20                       # conservative: v7x per-TC VMEM
    limit = (cap * 3) // 4                     # 48 MiB on v7x, 96 MiB on v5e/v6e
    budget = limit - 8 * 2**20                 # headroom for Mosaic scratch
    return budget, limit


def _pick_block_b(c_pad, h_pad, x_item, w_item, out_item, budget,
                  weight_buffers=1):
    """Largest batch tile (multiple of 8) fitting the budget, or None if the
    resident weights alone don't fit (caller should use the H-tiled path)."""
    weight_bytes = weight_buffers * (2 * c_pad * h_pad) * w_item
    per_row = (2 * c_pad * x_item              # double-buffered x tile
               + 2 * c_pad * out_item          # double-buffered out tile
               + c_pad * w_item                # .astype copy of x row
               + h_pad * w_item                # .astype copy of relu(h) row
               + h_pad * 4 + c_pad * 4)        # live f32 h / y accumulators
    avail = budget - weight_bytes
    if avail < per_row * _SUBLANE:
        return None
    max_block = 2048 if budget > 48 * 2**20 else 1024
    block_b = (avail // per_row // _SUBLANE) * _SUBLANE
    return int(min(max_block, block_b))


def _pick_htiled(c_pad, h_pad, x_item, w_item, out_item, budget):
    """(block_b, block_h) for the hidden-tiled fallback path."""
    block_h = _LANE
    while (block_h * 2 <= h_pad and h_pad % (block_h * 2) == 0
           and 4 * c_pad * (block_h * 2) * w_item < budget // 2):
        block_h *= 2
    weight_bytes = 4 * c_pad * block_h * w_item        # 2 tiles, double-buffered
    per_row = (2 * c_pad * x_item + 2 * c_pad * out_item
               + c_pad * 4                              # f32 accumulator scratch
               + c_pad * w_item + block_h * w_item      # .astype copies
               + block_h * 4 + c_pad * 4)               # f32 h / y
    avail = budget - weight_bytes
    block_b = max(_SUBLANE, (avail // per_row // _SUBLANE) * _SUBLANE)
    return int(min(block_b, 1024)), int(block_h)


def _even_steps_block(block_b, batch):
    """Best effort: make the batch grid have an even number of steps >= 2 so
    v7x's two TensorCores both get work and the pipeline can overlap."""
    block_b = min(block_b, _round_up(batch, _SUBLANE))
    steps = pl.cdiv(batch, block_b)
    if batch > _SUBLANE and (steps < 2 or steps % 2):
        target = max(2, steps + (steps % 2))
        block_b = max(_SUBLANE, _round_up(pl.cdiv(batch, target), _SUBLANE))
    return int(block_b)


# ---------------------------------------------------------------------------
# pallas_call wrappers
# ---------------------------------------------------------------------------
def _resident_forward(x_p, w1_p, w2_p, block_b, block_b_fallback,
                      vmem_limit_bytes, cost):
    batch, c_pad = x_p.shape
    h_pad = w1_p.shape[1]

    def call(bb, single_buffered):
        wkw = dict(pipeline_mode=pl.Buffered(1)) if single_buffered else {}
        grid_spec = pltpu.PrefetchScalarGridSpec(
            num_scalar_prefetch=0,
            grid=(pl.cdiv(batch, bb),),
            in_specs=[
                pl.BlockSpec((bb, c_pad), lambda i: (i, 0)),            # x tile
                pl.BlockSpec((c_pad, h_pad), lambda i: (0, 0), **wkw),  # W1 resident
                pl.BlockSpec((h_pad, c_pad), lambda i: (0, 0), **wkw),  # W2 resident
            ],
            out_specs=pl.BlockSpec((bb, c_pad), lambda i: (i, 0)),
        )
        return pl.pallas_call(
            _adapter_kernel,
            out_shape=jax.ShapeDtypeStruct((batch, c_pad), x_p.dtype),
            grid_spec=grid_spec,
            compiler_params=pltpu.CompilerParams(
                dimension_semantics=("parallel",),
                vmem_limit_bytes=int(vmem_limit_bytes)),
            cost_estimate=cost,
        )(x_p, w1_p, w2_p)

    try:
        return call(block_b, True)              # single-buffered resident weights
    except Exception:
        # Fallback if this jax build rejects pl.Buffered(1) on a BlockSpec:
        # identical numerics, weights just get the default double buffer (and a
        # block_b re-budgeted for that).
        return call(block_b_fallback, False)


def _htiled_forward(x_p, w1_p, w2_p, block_b, block_h, vmem_limit_bytes, cost):
    batch, c_pad = x_p.shape
    h_pad = w1_p.shape[1]
    grid = (pl.cdiv(batch, block_b), h_pad // block_h)
    return pl.pallas_call(
        _adapter_kernel_htiled,
        out_shape=jax.ShapeDtypeStruct((batch, c_pad), x_p.dtype),
        grid_spec=pltpu.PrefetchScalarGridSpec(
            num_scalar_prefetch=0,
            grid=grid,
            in_specs=[
                pl.BlockSpec((block_b, c_pad), lambda i, k: (i, 0)),   # x, resident per i
                pl.BlockSpec((c_pad, block_h), lambda i, k: (0, k)),   # W1 N-tile
                pl.BlockSpec((block_h, c_pad), lambda i, k: (k, 0)),   # W2 K-tile
            ],
            out_specs=pl.BlockSpec((block_b, c_pad), lambda i, k: (i, 0)),
            scratch_shapes=[pltpu.VMEM((block_b, c_pad), jnp.float32)],
        ),
        compiler_params=pltpu.CompilerParams(
            dimension_semantics=("parallel", "arbitrary"),
            vmem_limit_bytes=int(vmem_limit_bytes)),
        cost_estimate=cost,
    )(x_p, w1_p, w2_p)


# ---------------------------------------------------------------------------
# Public API
# ---------------------------------------------------------------------------
def prepare_adapter_weights(w1, w2):
    """Zero-pad weights to 128-lane multiples ONCE (call at init, not per step).

    w1: (c_in, hidden), w2: (hidden, c_in) — stored (in, out), i.e. the
    transpose of nn.Linear.weight. Zero padding is numerically exact through
    both matmuls + ReLUs. No-op if already lane-aligned.
    """
    c_in, hidden = w1.shape
    assert w2.shape == (hidden, c_in), "w2 must be (hidden, c_in)"
    c_pad = _round_up(c_in, _LANE)
    h_pad = _round_up(hidden, _LANE)
    if (c_pad, h_pad) == (c_in, hidden):
        return w1, w2
    w1 = jnp.pad(w1, ((0, c_pad - c_in), (0, h_pad - hidden)))
    w2 = jnp.pad(w2, ((0, h_pad - hidden), (0, c_pad - c_in)))
    return w1, w2


def adapter_forward(x, w1, w2, *, block_b=None, block_h=None,
                    vmem_budget_bytes=None, force_h_tiled=False):
    """Adapter forward: relu(relu(x @ w1) @ w2).

    x:  (B, C) activations (f32 or bf16; output follows x.dtype).
    w1: (C[,padded to 128], H[,padded])  first Linear weight, stored (in, out).
    w2: (H[,padded], C[,padded])         second Linear weight, stored (in, out).
    Returns (B, C) in x.dtype.
    """
    batch, c_in = x.shape
    # No-op when the caller already padded via prepare_adapter_weights.
    w1, w2 = prepare_adapter_weights(w1, w2)
    c_pad, h_pad = w1.shape
    assert c_pad >= c_in, "weight in-dim smaller than activation feature dim"

    budget, limit = _vmem_limits(vmem_budget_bytes)
    x_item = x.dtype.itemsize
    w_item = w1.dtype.itemsize
    out_item = x.dtype.itemsize

    # Feature padding only when c_in is not lane-aligned; batch is never padded
    # (Pallas masks the OOB tail of the last output block; rows are independent).
    x_p = x if c_pad == c_in else jnp.pad(x, ((0, 0), (0, c_pad - c_in)))

    cost = pl.CostEstimate(
        flops=4 * batch * c_pad * h_pad,
        transcendentals=0,
        bytes_accessed=(x_p.size * x_item + (w1.size + w2.size) * w_item
                        + batch * c_pad * out_item))

    auto_b = _pick_block_b(c_pad, h_pad, x_item, w_item, out_item, budget,
                           weight_buffers=1)

    if force_h_tiled or auto_b is None:
        # Weights don't fit resident (or caller forced it): hidden-tiled path.
        pb, ph = _pick_htiled(c_pad, h_pad, x_item, w_item, out_item, budget)
        bb = int(block_b) if block_b is not None else pb
        bh = int(block_h) if block_h is not None else ph
        assert bb % _SUBLANE == 0 and h_pad % bh == 0
        bb = min(bb, _round_up(batch, _SUBLANE))
        out_p = _htiled_forward(x_p, w1, w2, bb, bh, limit, cost)
    else:
        if block_b is None:
            bb = _even_steps_block(auto_b, batch)
            auto_b2 = _pick_block_b(c_pad, h_pad, x_item, w_item, out_item,
                                    budget, weight_buffers=2)
            bb_fb = _even_steps_block(auto_b2, batch) if auto_b2 else bb
        else:
            bb = bb_fb = int(block_b)
            assert bb % _SUBLANE == 0 and bb > 0
        out_p = _resident_forward(x_p, w1, w2, bb, bb_fb, limit, cost)

    return out_p if c_pad == c_in else out_p[:, :c_in]


def init_adapter_params(key, c_in, reduction=4, dtype=jnp.float32):
    """Synthetic init matching nn.Linear shapes, stored transposed as (in, out)."""
    hidden = c_in // reduction
    k1, k2 = jax.random.split(key)
    bound1 = 1.0 / (c_in ** 0.5)
    bound2 = 1.0 / (hidden ** 0.5)
    w1 = jax.random.uniform(k1, (c_in, hidden), dtype, minval=-bound1, maxval=bound1)
    w2 = jax.random.uniform(k2, (hidden, c_in), dtype, minval=-bound2, maxval=bound2)
    return w1, w2


if __name__ == "__main__":
    key = jax.random.PRNGKey(0)
    kx, kp = jax.random.split(key)

    # Small shapes consistent with Adapter(c_in=32, reduction=4).
    B, C, reduction = 64, 32, 4
    x = jax.random.normal(kx, (B, C), jnp.float32)
    w1, w2 = init_adapter_params(kp, C, reduction)          # (C,H) / (H,C), unpadded
    w1_p, w2_p = prepare_adapter_weights(w1, w2)            # pad ONCE at init

    ref = jnp.maximum(jnp.maximum(x @ w1, 0.0) @ w2, 0.0)

    # 1) f32, auto-tiled resident-weight path (even number of batch steps).
    out = jax.block_until_ready(adapter_forward(x, w1_p, w2_p))
    assert out.shape == (B, C) and out.dtype == x.dtype
    assert jnp.allclose(out, ref, atol=1e-5, rtol=1e-5), "f32 mismatch vs reference"

    # 2) bf16 activations + bf16 weights end-to-end (no wrapper casts; bf16 out).
    xb = x.astype(jnp.bfloat16)
    w1b, w2b = prepare_adapter_weights(w1.astype(jnp.bfloat16),
                                       w2.astype(jnp.bfloat16))
    outb = jax.block_until_ready(adapter_forward(xb, w1b, w2b))
    assert outb.shape == (B, C) and outb.dtype == jnp.bfloat16
    assert jnp.allclose(outb.astype(jnp.float32), ref, atol=5e-2, rtol=5e-2), \
        "bf16 mismatch vs reference"

    # 3) Hidden-tiled fallback path (auto-used for very large c_in) with a batch
    #    size that does not divide the block (tail rows masked on store).
    Bt = 44
    xt = jax.random.normal(kx, (Bt, C), jnp.float32)
    reft = jnp.maximum(jnp.maximum(xt @ w1, 0.0) @ w2, 0.0)
    outt = jax.block_until_ready(
        adapter_forward(xt, w1_p, w2_p, block_b=32, force_h_tiled=True))
    assert outt.shape == (Bt, C)
    assert jnp.allclose(outt, reft, atol=1e-5, rtol=1e-5), "h-tiled mismatch vs reference"

    print("KERNEL_OK")
</pallas_src>

<mosaic_0001>
module attributes {stable_mosaic.version = 11 : i64} {
  func.func @_adapter_kernel(%arg0: i32, %arg1: memref<32x128xf32, #tpu.memory_space<vmem>>, %arg2: memref<128x128xf32, #tpu.memory_space<vmem>>, %arg3: memref<128x128xf32, #tpu.memory_space<vmem>>, %arg4: memref<32x128xf32, #tpu.memory_space<vmem>>) attributes {dimension_semantics = [#tpu.dimension_semantics<parallel>], iteration_bounds = array<i64: 2>, scalar_prefetch = 0 : i64, scratch_operands = 0 : i64, tpu.core_type = #tpu.core_type<tc>, window_params = [{transform_indices = @transform_0, window_bounds = array<i64: 32, 128>}, {pipeline_mode = #tpu.pipeline_mode<synchronous>, transform_indices = @transform_1, window_bounds = array<i64: 128, 128>}, {pipeline_mode = #tpu.pipeline_mode<synchronous>, transform_indices = @transform_2, window_bounds = array<i64: 128, 128>}, {transform_indices = @transform_3, window_bounds = array<i64: 32, 128>}]} {
    %c0 = arith.constant 0 : index
    %c0_0 = arith.constant 0 : index
    %0 = vector.load %arg1[%c0, %c0_0] : memref<32x128xf32, #tpu.memory_space<vmem>>, vector<32x128xf32>
    %c0_1 = arith.constant 0 : index
    %c0_2 = arith.constant 0 : index
    %1 = vector.load %arg2[%c0_1, %c0_2] : memref<128x128xf32, #tpu.memory_space<vmem>>, vector<128x128xf32>
    %cst = arith.constant dense<0.000000e+00> : vector<32x128xf32>
    %2 = tpu.matmul %0, %1, %cst {dimension_numbers = #tpu.dot_dimension_numbers<[1], [0], [0], [1], [0, 0, 1, 1], [], []>} : vector<32x128xf32>, vector<128x128xf32>, vector<32x128xf32> -> vector<32x128xf32>
    %cst_3 = arith.constant 0.000000e+00 : f32
    %3 = vector.broadcast %cst_3 : f32 to vector<32x128xf32>
    %4 = arith.maximumf %2, %3 : vector<32x128xf32>
    %c0_4 = arith.constant 0 : index
    %c0_5 = arith.constant 0 : index
    %5 = vector.load %arg3[%c0_4, %c0_5] : memref<128x128xf32, #tpu.memory_space<vmem>>, vector<128x128xf32>
    %cst_6 = arith.constant dense<0.000000e+00> : vector<32x128xf32>
    %6 = tpu.matmul %4, %5, %cst_6 {dimension_numbers = #tpu.dot_dimension_numbers<[1], [0], [0], [1], [0, 0, 1, 1], [], []>} : vector<32x128xf32>, vector<128x128xf32>, vector<32x128xf32> -> vector<32x128xf32>
    %cst_7 = arith.constant 0.000000e+00 : f32
    %7 = vector.broadcast %cst_7 : f32 to vector<32x128xf32>
    %8 = arith.maximumf %6, %7 : vector<32x128xf32>
    %c0_8 = arith.constant 0 : index
    %c0_9 = arith.constant 0 : index
    %9 = vector.load %arg4[%c0_8, %c0_9] : memref<32x128xf32, #tpu.memory_space<vmem>>, vector<32x128xf32>
    tpu.vector_store %arg4[%c0_8, %c0_9], %8 {strides = array<i32>} : memref<32x128xf32, #tpu.memory_space<vmem>>, vector<32x128xf32>,
    return
  }
  func.func @transform_0(%arg0: i32) -> (i32, i32) {
    %c0_i32 = arith.constant 0 : i32
    %c0_i32_0 = arith.constant 0 : i32
    return %arg0, %c0_i32 : i32, i32
  }
  func.func @transform_1(%arg0: i32) -> (i32, i32) {
    %c0_i32 = arith.constant 0 : i32
    %c0_i32_0 = arith.constant 0 : i32
    %c0_i32_1 = arith.constant 0 : i32
    return %c0_i32, %c0_i32_0 : i32, i32
  }
  func.func @transform_2(%arg0: i32) -> (i32, i32) {
    %c0_i32 = arith.constant 0 : i32
    %c0_i32_0 = arith.constant 0 : i32
    %c0_i32_1 = arith.constant 0 : i32
    return %c0_i32, %c0_i32_0 : i32, i32
  }
  func.func @transform_3(%arg0: i32) -> (i32, i32) {
    %c0_i32 = arith.constant 0 : i32
    %c0_i32_0 = arith.constant 0 : i32
    return %arg0, %c0_i32 : i32, i32
  }
}

module attributes {stable_mosaic.version = 11 : i64} {
  func.func @_adapter_kernel(%arg0: i32, %arg1: memref<32x128xf32, #tpu.memory_space<vmem>>, %arg2: memref<128x128xf32, #tpu.memory_space<vmem>>, %arg3: memref<128x128xf32, #tpu.memory_space<vmem>>, %arg4: memref<32x128xf32, #tpu.memory_space<vmem>>) attributes {dimension_semantics = [#tpu.dimension_semantics<parallel>], iteration_bounds = array<i64: 2>, scalar_prefetch = 0 : i64, scratch_operands = 0 : i64, tpu.core_type = #tpu.core_type<tc>, window_params = [{transform_indices = @transform_0, window_bounds = array<i64: 32, 128>}, {pipeline_mode = #tpu.pipeline_mode<synchronous>, transform_indices = @transform_1, window_bounds = array<i64: 128, 128>}, {pipeline_mode = #tpu.pipeline_mode<synchronous>, transform_indices = @transform_2, window_bounds = array<i64: 128, 128>}, {transform_indices = @transform_3, window_bounds = array<i64: 32, 128>}]} {
    %c0 = arith.constant 0 : index
    %c0_0 = arith.constant 0 : index
    %0 = vector.load %arg1[%c0, %c0_0] : memref<32x128xf32, #tpu.memory_space<vmem>>, vector<32x128xf32>
    %c0_1 = arith.constant 0 : index
    %c0_2 = arith.constant 0 : index
    %1 = vector.load %arg2[%c0_1, %c0_2] : memref<128x128xf32, #tpu.memory_space<vmem>>, vector<128x128xf32>
    %cst = arith.constant dense<0.000000e+00> : vector<32x128xf32>
    %2 = tpu.matmul %0, %1, %cst {dimension_numbers = #tpu.dot_dimension_numbers<[1], [0], [0], [1], [0, 0, 1, 1], [], []>} : vector<32x128xf32>, vector<128x128xf32>, vector<32x128xf32> -> vector<32x128xf32>
    %cst_3 = arith.constant 0.000000e+00 : f32
    %3 = vector.broadcast %cst_3 : f32 to vector<32x128xf32>
    %4 = arith.maximumf %2, %3 : vector<32x128xf32>
    %c0_4 = arith.constant 0 : index
    %c0_5 = arith.constant 0 : index
    %5 = vector.load %arg3[%c0_4, %c0_5] : memref<128x128xf32, #tpu.memory_space<vmem>>, vector<128x128xf32>
    %cst_6 = arith.constant dense<0.000000e+00> : vector<32x128xf32>
    %6 = tpu.matmul %4, %5, %cst_6 {dimension_numbers = #tpu.dot_dimension_numbers<[1], [0], [0], [1], [0, 0, 1, 1], [], []>} : vector<32x128xf32>, vector<128x128xf32>, vector<32x128xf32> -> vector<32x128xf32>
    %cst_7 = arith.constant 0.000000e+00 : f32
    %7 = vector.broadcast %cst_7 : f32 to vector<32x128xf32>
    %8 = arith.maximumf %6, %7 : vector<32x128xf32>
    %c0_8 = arith.constant 0 : index
    %c0_9 = arith.constant 0 : index
    %9 = vector.load %arg4[%c0_8, %c0_9] : memref<32x128xf32, #tpu.memory_space<vmem>>, vector<32x128xf32>
    tpu.vector_store %arg4[%c0_8, %c0_9], %8 {strides = array<i32>} : memref<32x128xf32, #tpu.memory_space<vmem>>, vector<32x128xf32>,
    return
  }
  func.func @transform_0(%arg0: i32) -> (i32, i32) {
    %c0_i32 = arith.constant 0 : i32
    %c0_i32_0 = arith.constant 0 : i32
    return %arg0, %c0_i32 : i32, i32
  }
  func.func @transform_1(%arg0: i32) -> (i32, i32) {
    %c0_i32 = arith.constant 0 : i32
    %c0_i32_0 = arith.constant 0 : i32
    %c0_i32_1 = arith.constant 0 : i32
    return %c0_i32, %c0_i32_0 : i32, i32
  }
  func.func @transform_2(%arg0: i32) -> (i32, i32) {
    %c0_i32 = arith.constant 0 : i32
    %c0_i32_0 = arith.constant 0 : i32
    %c0_i32_1 = arith.constant 0 : i32
    return %c0_i32, %c0_i32_0 : i32, i32
  }
  func.func @transform_3(%arg0: i32) -> (i32, i32) {
    %c0_i32 = arith.constant 0 : i32
    %c0_i32_0 = arith.constant 0 : i32
    return %arg0, %c0_i32 : i32, i32
  }
}

</mosaic_0001>

<bundles_post_ra>
// kernel: tpu_custom_call.1
= control target key start
LH: loop header
LB: loop body
LE: loop exit
PB: predicated region body
PF: predicated region fallthrough
CT: control target
= control target key end

     0   :  { %8 = vsyncpa [#allocation3], 0  ;;  %s1254_s0 = inlined_call_operand.hbm [shape: f32[64,128], index: 0, kind: input, shape index: {}]   ;;  %s1255_s1 = inlined_call_operand.hbm [shape: f32[128,128], index: 1, kind: input, shape index: {}]   ;;  %s1256_s2 = inlined_call_operand.hbm [shape: f32[128,128], index: 2, kind: input, shape index: {}]   ;;  %s1257_s3 = inlined_call_operand.hbm [shape: f32[64,128], index: 3, kind: output, shape index: {}]  }
   0x1   :  { %10 = vsyncpa [#allocation3 + $0x1], 0 }
   0x2   :  { %11 = vsyncpa [#allocation6], 0 }
   0x3   :  { %12 = vsyncpa [#allocation4], 0 }
   0x4   :  { %14 = vsyncpa [#allocation4 + $0x1], 0  ;;  %s1001_s12 = smov 0   ;;  %s1003_s13 = smov 0  }
   0x5   :  { %s1005_s14 = smov 0   ;;  %s1007_s15 = smov 0  }
   0x6 LB: > { %s1022_s16 = sadd.s32 4294967295, %s971_s15   ;;  %s544_s17 = sadd.s32 4294967294, %s971_s15   ;;  %s971_s15 = sphi %s1007_s15, %s1277_s15   ;;  %s967_s14 = sphi %s1005_s14, %s1276_s14   ;;  %s963_s13 = sphi %s1003_s13, %s1275_s13   ;;  %s959_s12 = sphi %s1001_s12, %s1274_s12  }
   0x7   : > { %p40_p0 = scmp.ne.s32.totalorder %s963_s13, %s959_s12  ;;  %p1258_p1 = scmp.eq.s32.totalorder %s1022_s16, 0 }
   0x8   : > { %p112_p3 = scmp.eq.s32.totalorder %s544_s17, 1  ;;  %p545_p5 = scmp.ge.s32.totalorder %s971_s15, 1 }
   0x9   : > { %p1031_p4 = por %p1258_p1, %p40_p0  ;;  %p119_p7 = scmp.lt.s32.totalorder %s971_s15, 3 }
   0xa   : > { %p1036_p6 = por %p112_p3, %p40_p0  ;;  %s973_s21 = smov [#allocation5]  }
   0xb   : > { %s1261_s18 = scalar_select %p1031_p4, 1, 0 }
   0xc   : > { %s1262_s19 = scalar_select %p1036_p6, 1, 0 }
   0xd   : > { %p1041_p8 = pnand %p545_p5, %p119_p7  ;;  %s131_s22 = sshll.u32 %s973_s21, 4  ;;  %s1045_s22 = int_to_ptr.vmem [resolvable:$true] %s131_s22 }
   0xe   : > { %s974_s24 = smov [#allocation7]   ;;  %s815_s28 = scalar_lea.hbm %s1255_s1, 2048 }
   0xf   : > { %p756_p9 = pneg %p1041_p8  ;;  %s144_s25 = sshll.u32 %s974_s24, 4  ;;  %s1056_s25 = int_to_ptr.vmem [resolvable:$true] %s144_s25 }
  0x10   : > { %p816_p12 = scmp.ne.s32.totalorder %s1255_s1, %s815_s28  ;;  %p822_p5 = scmp.lt.u32.totalorder %s815_s28, %s1255_s1 }
  0x11   : > { %p1052_p11 = pnand %p756_p9, %p1258_p1 }
  0x13   : > { %p817_p13 = pneg %p1052_p11 }
  0x15   : > { %p818_p0 = pnand %p817_p13, %p816_p12 }
  0x17   : > { %p819_p3 = pneg %p818_p0 }
  0x19   : > { %p824_p7 = pnand %p822_p5, %p819_p3 }
  0x1b   : > { %827 = shalt.err (!%p824_p7)
}
  0x1c   : > { %s828_s6 = scalar_lea.vmem %s1045_s22, 2048  ;;  %p836_p2 = scmp.lt.s32.totalorder %s1045_s22, %s1045_s22 }
  0x1d   : > { %p829_p9 = scmp.ne.s32.totalorder %s1045_s22, %s828_s6  ;;  %p837_p12 = scmp.lt.s32.totalorder %s828_s6, %s828_s6 }
  0x1f   : > { %p831_p10 = pnand %p829_p9, %p817_p13  ;;  %p838_p0 = por %p837_p12, %p836_p2 }
  0x21   : > { %p832_p1 = pneg %p831_p10 }
  0x23   : > { %p839_p6 = pnand %p838_p0, %p832_p1 }
  0x25   : > { %842 = shalt.err (!%p839_p6)
}
  0x26   : > { %s975_s7 = smov 128   ;;  %s976_s8 = smov 8  }
  0x27   : > { %759 = dma.hbm_to_vmem [thread:$0]  (!%p1052_p11), %s1255_s1, 2048, %s1045_s22, [#allocation6], %s975_s7, %s975_s7, %s976_s8  }
  0x28   : > { %s843_s21 = scalar_lea.hbm %s1256_s2, 2048 }
  0x29   : > { %p844_p1 = scmp.ne.s32.totalorder %s1256_s2, %s843_s21  ;;  %p850_p10 = scmp.lt.u32.totalorder %s843_s21, %s1256_s2 }
  0x2b   : > { %p846_p2 = pnand %p844_p1, %p817_p13 }
  0x2d   : > { %p847_p6 = pneg %p846_p2 }
  0x2f   : > { %p852_p3 = pnand %p850_p10, %p847_p6 }
  0x31   : > { %855 = shalt.err (!%p852_p3)
}
  0x32   : > { %s856_s22 = scalar_lea.vmem %s1056_s25, 2048  ;;  %p864_p12 = scmp.lt.s32.totalorder %s1056_s25, %s1056_s25 }
  0x33   : > { %p857_p5 = scmp.ne.s32.totalorder %s1056_s25, %s856_s22  ;;  %p865_p0 = scmp.lt.s32.totalorder %s856_s22, %s856_s22 }
  0x35   : > { %p859_p7 = pnand %p857_p5, %p817_p13  ;;  %p866_p1 = por %p865_p0, %p864_p12 }
  0x37   : > { %p860_p9 = pneg %p859_p7 }
  0x39   : > { %p867_p2 = pnand %p866_p1, %p860_p9 }
  0x3b   : > { %870 = shalt.err (!%p867_p2)
}
  0x3c   : > { %762 = dma.hbm_to_vmem [thread:$0]  (!%p1052_p11), %s1256_s2, 2048, %s1056_s25, [#allocation6], %s975_s7, %s975_s7, %s976_s8  }
  0x3d   : > { %s1117_s23 = sadd.s32 1, %s971_s15   ;;  %s27_s4 = sadd.s32 1, %s967_s14 }
  0x3e   : > { %s24_s5 = ssub.s32 %s971_s15, %s1117_s23  ;;  %p34_p13 = scmp.ne.s32.totalorder %s967_s14, %s963_s13 }
  0x3f   : > { %p25_p6 = scmp.eq.s32.totalorder %s24_s5, 0  ;;  %p35_p10 = scmp.eq.s32.totalorder %s971_s15, 0 }
  0x40   : > { %p1265_p3 = scmp.eq.s32.totalorder %s1022_s16, 1  ;;  %p773_p7 = scmp.lt.s32.totalorder %s971_s15, 2 }
  0x41   : > { %s1133_s9 = scalar_select %p25_p6, %s967_s14, %s27_s4  }
  0x42   : > { %p1127_p5 = por %p1265_p3, %p34_p13  ;;  %p36_p9 = por %p35_p10, %p34_p13 }
  0x43   : > { %s158_s10 = sand.u32 1, %s967_s14   ;;  %s562_s25 = sshll.u32 %s971_s15, 9 }
  0x44   : > { %s1266_s6 = scalar_select %p1127_p5, 1, 0 }
  0x45   : > { %s549_s11 = sshll.u32 %s158_s10, 5  ;;  %s1140_s24 = scalar_lea.hbm %s1254_s0, %s562_s25 }
  0x46   : > { %s162_s26 = scalar_lea.vmem [#allocation2], %s549_s11  ;;  %p1144_p11 = pnand %p773_p7, %p36_p9 }
  0x47   : > { %s169_s27 = sshll.u32 %s162_s26, 4  ;;  %s1148_s22 = scalar_lea.sflag [#allocation3], %s158_s10  ;;  %s1142_s27 = int_to_ptr.vmem [resolvable:$true] %s169_s27 }
  0x48   : > { %s871_s29 = scalar_lea.hbm %s1140_s24, 512  ;;  %p873_p0 = pneg %p1144_p11 }
  0x49   : > { %p872_p12 = scmp.ne.s32.totalorder %s1140_s24, %s871_s29  ;;  %s876_s5 = scalar_lea.hbm %s1254_s0, 1024 }
  0x4a   : > { %p877_p13 = scmp.lt.u32.totalorder %s1140_s24, %s1254_s0  ;;  %p878_p6 = scmp.lt.u32.totalorder %s876_s5, %s871_s29 }
  0x4b   : > { %p874_p1 = pnand %p873_p0, %p872_p12  ;;  %p880_p3 = scmp.lt.u32.totalorder %s871_s29, %s1140_s24 }
  0x4c   : > { %p879_p10 = por %p878_p6, %p877_p13 }
  0x4d   : > { %p875_p2 = pneg %p874_p1 }
  0x4e   : > { %p881_p7 = por %p880_p3, %p879_p10 }
  0x50   : > { %p882_p9 = pnand %p881_p7, %p875_p2 }
  0x52   : > { %885 = shalt.err (!%p882_p9)
}
  0x53   : > { %s886_s10 = scalar_lea.vmem %s1142_s27, 512  ;;  %s977_s17 = smov [#allocation2]  }
  0x54   : > { %p887_p12 = scmp.ne.s32.totalorder %s1142_s27, %s886_s10  ;;  %s891_s21 = sshll.u32 %s977_s17, 4  ;;  %s892_s21 = int_to_ptr.vmem [resolvable:$false] %s891_s21 }
  0x55   : > { %s893_s26 = scalar_lea.vmem %s892_s21, 1024  ;;  %p894_p4 = scmp.lt.s32.totalorder %s1142_s27, %s892_s21 }
  0x56   : > { %p889_p1 = pnand %p887_p12, %p873_p0  ;;  %p895_p13 = scmp.lt.s32.totalorder %s893_s26, %s886_s10 }
  0x58   : > { %p890_p5 = pneg %p889_p1  ;;  %p896_p6 = por %p895_p13, %p894_p4 }
  0x5a   : > { %p897_p10 = pnand %p896_p6, %p890_p5 }
  0x5c   : > { %900 = shalt.err (!%p897_p10)
}
  0x5d   : > { %766 = dma.hbm_to_vmem [thread:$0]  (!%p1144_p11), %s1140_s24, 512, %s1142_s27, %s1148_s22, %s975_s7, %s975_s7, %s976_s8  }
  0x5e   : > { %181 = sbr.rel (%p1041_p8) target bundleno = 590 (0x24e), region = 32  ;;  %s1182_s29 = sand.u32 (!%p1041_p8), 1, %s963_s13  }
  0x5f   : > { %s553_s30 = sshll.u32 (!%p1041_p8), %s1182_s29, 5  ;;  %s184_s4 = scalar_lea.sflag (!%p1041_p8), [#allocation3], %s1182_s29 }
  0x60   : > { %s1188_s28 = scalar_lea.vmem (!%p1041_p8), [#allocation2], %s553_s30  ;;  %p1268_p4 = scmp.ne.s32.totalorder (!%p1041_p8), %s1261_s18, 0 }
  0x65   : > { %946 = dma.done.wait (%p1268_p4), %s184_s4, 512  }
  0x66   : > { %948 = vsyncadd (%p1268_p4), %s184_s4, 4294966784  ;;  %p1269_p5 = scmp.eq.s32.totalorder %s1022_s16, 0 }
  0x68   : > { %950 = dma.done.wait (%p1269_p5), [#allocation6], 4096   ;;  %p1270_p8 = pmov %p1269_p5 }
  0x69   : > { %v224_v0 = vld [vmem:[#allocation5] sm:$0xff]  ;;  %v225_v1 = vld [vmem:[#allocation5 + $0x8] sm:$0xff]  ;;  %v226_v2 = vld [vmem:[#allocation5 + $0x10] sm:$0xff]  ;;  %s217_s18 = scalar_lea.vmem [#allocation8], %s553_s30  ;;  %s563_s7 = sshll.u32 %s1022_s16, 9 }
  0x6a   : > { %952 = vsyncadd (%p1270_p8), [#allocation6], 4294963200  ;;  %v680_v3 = vpack.c.bf16 %v225_v1, %v224_v0  ;;  %v227_v4 = vld [vmem:[#allocation5 + $0x18] sm:$0xff]  ;;  %v228_v6 = vld [vmem:[#allocation5 + $0x20] sm:$0xff]  ;;  %s452_s20 = sshll.u32 %s217_s18, 4  ;;  %s1210_s27 = scalar_lea.hbm %s1257_s3, %s563_s7  ;;  %s1205_s20 = int_to_ptr.vmem [resolvable:$true] %s452_s20 }
  0x6b   : > { %v684_v5 = vpack.c.bf16 %v227_v4, %v226_v2  ;;  %v229_v7 = vld [vmem:[#allocation5 + $0x28] sm:$0xff]  ;;  %v220_v9 = vld [vmem:[%s1188_s28] sm:$0xff]  ;;  %v230_v10 = vld [vmem:[#allocation5 + $0x30] sm:$0xff]  ;;  %s439_s22 = scalar_lea.sflag [#allocation4], %s1182_s29  ;;  %s901_s16 = scalar_lea.vmem %s1205_s20, 512 }
  0x6c   : > { %681 = vmatprep.subr.bf16.mxu0 %v680_v3  ;;  %v688_v8 = vpack.c.bf16 %v229_v7, %v228_v6  ;;  %v231_v11 = vld [vmem:[#allocation5 + $0x38] sm:$0xff]  ;;  %636 = vmatprep.mubr.f32.mxu0 %v220_v9  ;;  %v329_v12 = vld [vmem:[#allocation7] sm:$0xff]  ;;  %v330_v13 = vld [vmem:[#allocation7 + $0x8] sm:$0xff]  ;;  %p902_p11 = scmp.ne.s32.totalorder %s1205_s20, %s901_s16  ;;  %p1271_p0 = scmp.ne.s32.totalorder %s1266_s6, 0 }
  0x6d   : > { %683 = vmatpush3.bf16.msra.mxu0 %v680_v3  ;;  %v331_v14 = vld [vmem:[#allocation7 + $0x10] sm:$0xff]  ;;  %v332_v15 = vld [vmem:[#allocation7 + $0x18] sm:$0xff]  ;;  %v712_v16 = vpack.c.bf16 %v330_v13, %v329_v12  ;;  %v692_v18 = vpack.c.bf16 %v231_v11, %v230_v10  ;;  %v333_v19 = vld [vmem:[#allocation7 + $0x20] sm:$0xff]  ;;  %s978_s5 = smov [#allocation8]  }
  0x6e   : > { %685 = vmatprep.subr.bf16.mxu0 %v684_v5  ;;  %v716_v17 = vpack.c.bf16 %v332_v15, %v331_v14  ;;  %v334_v20 = vld [vmem:[#allocation7 + $0x28] sm:$0xff]  ;;  %v232_v21 = vld [vmem:[#allocation5 + $0x40] sm:$0xff]  ;;  %v335_v25 = vld [vmem:[#allocation7 + $0x30] sm:$0xff]  ;;  %p903_p2 = pnand %p902_p11, %p1271_p0  ;;  %s905_s11 = sshll.u32 %s978_s5, 4  ;;  %s906_s11 = int_to_ptr.vmem [resolvable:$false] %s905_s11 }
  0x6f   : > { %v233_v22 = vld [vmem:[#allocation5 + $0x48] sm:$0xff]  ;;  %713 = vmatprep.subr.bf16.mxu1 %v712_v16  ;;  %v720_v23 = vpack.c.bf16 %v334_v20, %v333_v19  ;;  %v336_v26 = vld [vmem:[#allocation7 + $0x38] sm:$0xff]  ;;  %v234_v27 = vld [vmem:[#allocation5 + $0x50] sm:$0xff]  ;;  %s907_s25 = scalar_lea.vmem %s906_s11, 1024  ;;  %p908_p7 = scmp.lt.s32.totalorder %s1205_s20, %s906_s11 }
  0x70   : > { %715 = vmatpush3.bf16.msra.mxu1 %v712_v16  ;;  %v696_v24 = vpack.c.bf16 %v233_v22, %v232_v21  ;;  %v235_v28 = vld [vmem:[#allocation5 + $0x58] sm:$0xff]  ;;  %v724_v29 = vpack.c.bf16 %v336_v26, %v335_v25  ;;  %v337_v31 = vld [vmem:[#allocation7 + $0x40] sm:$0xff]  ;;  %v338_v32 = vld [vmem:[#allocation7 + $0x48] sm:$0xff]  ;;  %p904_p3 = pneg %p903_p2  ;;  %p909_p9 = scmp.lt.s32.totalorder %s907_s25, %s901_s16 }
  0x71   : > { %687 = vmatpush3.bf16.msra.mxu0 %v684_v5  ;;  %717 = vmatprep.subr.bf16.mxu1 %v716_v17  ;;  %v700_v30 = vpack.c.bf16 %v235_v28, %v234_v27  ;;  %v236_v33 = vld [vmem:[#allocation5 + $0x60] sm:$0xff]  ;;  %v237_v34 = vld [vmem:[#allocation5 + $0x68] sm:$0xff]  ;;  %v728_v35 = vpack.c.bf16 %v338_v32, %v337_v31  ;;  %v339_v37 = vld [vmem:[#allocation7 + $0x50] sm:$0xff] }
  0x72   : > { %689 = vmatprep.subr.bf16.mxu0 %v688_v8  ;;  %v704_v36 = vpack.c.bf16 %v237_v34, %v236_v33  ;;  %v340_v38 = vld [vmem:[#allocation7 + $0x58] sm:$0xff]  ;;  %v238_v39 = vld [vmem:[#allocation5 + $0x70] sm:$0xff]  ;;  %v341_v43 = vld [vmem:[#allocation7 + $0x60] sm:$0xff]  ;;  %p910_p12 = por %p909_p9, %p908_p7 }
  0x73   : > { %v239_v40 = vld [vmem:[#allocation5 + $0x78] sm:$0xff]  ;;  %v732_v41 = vpack.c.bf16 %v340_v38, %v339_v37  ;;  %v342_v44 = vld [vmem:[#allocation7 + $0x68] sm:$0xff]  ;;  %v222_v47 = vld [vmem:[%s1188_s28 + $0x10] sm:$0xff] }
  0x74   : > { %719 = vmatpush3.bf16.msra.mxu1 %v716_v17  ;;  %v708_v42 = vpack.c.bf16 %v239_v40, %v238_v39  ;;  %v736_v45 = vpack.c.bf16 %v342_v44, %v341_v43  ;;  %v221_v46 = vld [vmem:[%s1188_s28 + $0x8] sm:$0xff]  ;;  %v223_v48 = vld [vmem:[%s1188_s28 + $0x18] sm:$0xff]  ;;  %v343_v49 = vld [vmem:[#allocation7 + $0x70] sm:$0xff]  ;;  %p911_p1 = pnand %p910_p12, %p904_p3 }
  0x75   : > { %691 = vmatpush3.bf16.msra.mxu0 %v688_v8  ;;  %721 = vmatprep.subr.bf16.mxu1 %v720_v23  ;;  %v344_v50 = vld [vmem:[#allocation7 + $0x78] sm:$0xff] }
  0x76   : > { %693 = vmatprep.subr.bf16.mxu0 %v692_v18  ;;  %v740_v51 = vpack.c.bf16 %v344_v50, %v343_v49 }
  0x78   : > { %723 = vmatpush3.bf16.msra.mxu1 %v720_v23 }
  0x79   : > { %695 = vmatpush3.bf16.msra.mxu0 %v692_v18  ;;  %725 = vmatprep.subr.bf16.mxu1 %v724_v29 }
  0x7a   : > { %697 = vmatprep.subr.bf16.mxu0 %v696_v24 }
  0x7c   : > { %727 = vmatpush3.bf16.msra.mxu1 %v724_v29 }
  0x7d   : > { %699 = vmatpush3.bf16.msra.mxu0 %v696_v24  ;;  %729 = vmatprep.subr.bf16.mxu1 %v728_v35 }
  0x7e   : > { %701 = vmatprep.subr.bf16.mxu0 %v700_v30 }
  0x80   : > { %731 = vmatpush3.bf16.msra.mxu1 %v728_v35 }
  0x81   : > { %703 = vmatpush3.bf16.msra.mxu0 %v700_v30  ;;  %733 = vmatprep.subr.bf16.mxu1 %v732_v41 }
  0x82   : > { %705 = vmatprep.subr.bf16.mxu0 %v704_v36 }
  0x84   : > { %735 = vmatpush3.bf16.msra.mxu1 %v732_v41 }
  0x85   : > { %707 = vmatpush3.bf16.msra.mxu0 %v704_v36  ;;  %737 = vmatprep.subr.bf16.mxu1 %v736_v45 }
  0x86   : > { %709 = vmatprep.subr.bf16.mxu0 %v708_v42 }
  0x88   : > { %739 = vmatpush3.bf16.msra.mxu1 %v736_v45 }
  0x89   : > { %711 = vmatpush3.bf16.msra.mxu0 %v708_v42  ;;  %741 = vmatprep.subr.bf16.mxu1 %v740_v51 }
  0x8c   : > { %637 = vmatmul.mubr.f32.vlgmr.msra.gmra.mrb[0].mxu0 %v221_v46  ;;  %743 = vmatpush3.bf16.msra.mxu1 %v740_v51 }
  0x8d   : > { %639 = vmatprep.mubr.f32.mxu0 %v222_v47 }
  0x90   : > { %640 = vmatmul.mubr.f32.gmra.mrb[2].mxu0 %v223_v48 }
 0x15f   : > { %v638_v52 = vpop.f32.mrb[0].mxu0 }
 0x160   : > { %v306_v53 = vpop.f32.mrb[1].mxu0  ;;  %v326_v55 = vmax.f32 %v638_v52, 0.0 }
 0x161   : > { %v325_v54 = vmax.f32 %v306_v53, 0.0 }
 0x163   : > { %v641_v56 = vpop.f32.mrb[2].mxu0  ;;  %674 = vmatprep.mubr.f32.mxu1 %v325_v54 }
 0x164   : > { %v316_v57 = vpop.f32.mrb[3].mxu0  ;;  %675 = vmatmul.mubr.f32.vlgmr.msra.gmra.mrb[0].mxu1 %v326_v55  ;;  %v328_v59 = vmax.f32 %v641_v56, 0.0 }
 0x165   : > { %v327_v58 = vmax.f32 %v316_v57, 0.0 }
 0x167   : > { %677 = vmatprep.mubr.f32.mxu1 %v327_v58 }
 0x168   : > { %678 = vmatmul.mubr.f32.gmra.mrb[2].mxu1 %v328_v59 }
 0x237   : > { %v676_v60 = vpop.f32.mrb[0].mxu1 }
 0x238   : > { %v431_v61 = vmax.f32 %v676_v60, 0.0  ;;  %v411_v62 = vpop.f32.mrb[1].mxu1 }
 0x239   : > { %v430_v63 = vmax.f32 %v411_v62, 0.0 }
 0x23a   : > { %435 = vst [vmem:[%s217_s18 + $0x8] sm:$0xff] %v431_v61 }
 0x23b   : > { %434 = vst [vmem:[%s217_s18] sm:$0xff] %v430_v63  ;;  %v679_v0 = vpop.f32.mrb[2].mxu1 }
 0x23c   : > { %v433_v1 = vmax.f32 %v679_v0, 0.0  ;;  %v421_v2 = vpop.f32.mrb[3].mxu1 }
 0x23d   : > { %v432_v3 = vmax.f32 %v421_v2, 0.0 }
 0x23e   : > { %437 = vst [vmem:[%s217_s18 + $0x18] sm:$0xff] %v433_v1 }
 0x23f   : > { %436 = vst [vmem:[%s217_s18 + $0x10] sm:$0xff] %v432_v3 }
 0x240   : > { %914 = shalt.err (!%p911_p1)
}
 0x241   : > { %s915_s10 = scalar_lea.hbm %s1210_s27, 512  ;;  %s919_s26 = scalar_lea.hbm %s1257_s3, 1024 }
 0x242   : > { %p916_p13 = scmp.ne.s32.totalorder %s1210_s27, %s915_s10  ;;  %p920_p4 = scmp.lt.u32.totalorder %s1210_s27, %s1257_s3 }
 0x243   : > { %p921_p5 = scmp.lt.u32.totalorder %s919_s26, %s915_s10  ;;  %p923_p11 = scmp.lt.u32.totalorder %s915_s10, %s1210_s27 }
 0x244   : > { %p917_p6 = pnand %p916_p13, %p1271_p0 }
 0x245   : > { %p922_p8 = por %p921_p5, %p920_p4 }
 0x246   : > { %p918_p10 = pneg %p917_p6 }
 0x247   : > { %p924_p2 = por %p923_p11, %p922_p8 }
 0x249   : > { %p925_p3 = pnand %p924_p2, %p918_p10 }
 0x24b   : > { %928 = shalt.err (!%p925_p3)
}
 0x24c   : > { %s979_s28 = smov 128   ;;  %s980_s18 = smov 8  }
 0x24d   : > { %754 = dma.vmem_to_hbm [thread:$0]  (%p1271_p0), %s1205_s20, 512, %s1210_s27, %s439_s22, %s979_s28, %s979_s28, %s980_s18  }
 0x24e PF: > { %s467_s7 = sand.u32 1, %s959_s12   ;;  %p1272_p7 = scmp.ne.s32.totalorder %s1262_s19, 0 }
 0x24f   : > { %p1273_p9 = scmp.ge.s32.totalorder %s971_s15, 2  ;;  %s468_s8 = scalar_lea.sflag [#allocation4], %s467_s7 }
 0x251   : > { %p768_p12 = pnand %p1273_p9, %p1272_p7 }
 0x253   : > { %954 = dma.done.wait (!%p768_p12), %s468_s8, 512  }
 0x254   : > { %956 = vsyncadd (!%p768_p12), %s468_s8, 4294966784  ;;  %p17_p1 = scmp.ge.s32.totalorder %s1117_s23, 4   ;;  %s1274_s12 = smov %s963_s13 }
 0x255   : > { %s1275_s13 = smov %s967_s14  ;;  %s1276_s14 = smov %s1133_s9 }
 0x256   : > { %s1277_s15 = smov %s1117_s23  ;;  %19 = sbr.rel (!%p17_p1) target bundleno = 6 (0x6), region = 85 }
 0x25d   :  { %473 = vsyncpa [#allocation3], 1 }
 0x25e   :  { %475 = vsyncpa [#allocation3 + $0x1], 1 }
 0x25f   :  { %476 = vsyncpa [#allocation6], 1 }
 0x260   :  { %477 = vsyncpa [#allocation4], 1 }
 0x261   :  { %479 = vsyncpa [#allocation4 + $0x1], 1 }

// kernel: tpu_custom_call.1
= control target key start
LH: loop header
LB: loop body
LE: loop exit
PB: predicated region body
PF: predicated region fallthrough
CT: control target
= control target key end

     0   :  { %8 = vsyncpa [#allocation3], 0  ;;  %s1254_s0 = inlined_call_operand.hbm [shape: f32[64,128], index: 0, kind: input, shape index: {}]   ;;  %s1255_s1 = inlined_call_operand.hbm [shape: f32[128,128], index: 1, kind: input, shape index: {}]   ;;  %s1256_s2 = inlined_call_operand.hbm [shape: f32[128,128], index: 2, kind: input, shape index: {}]   ;;  %s1257_s3 = inlined_call_operand.hbm [shape: f32[64,128], index: 3, kind: output, shape index: {}]  }
   0x1   :  { %10 = vsyncpa [#allocation3 + $0x1], 0 }
   0x2   :  { %11 = vsyncpa [#allocation6], 0 }
   0x3   :  { %12 = vsyncpa [#allocation4], 0 }
   0x4   :  { %14 = vsyncpa [#allocation4 + $0x1], 0  ;;  %s1001_s12 = smov 0   ;;  %s1003_s13 = smov 0  }
   0x5   :  { %s1005_s14 = smov 0   ;;  %s1007_s15 = smov 0  }
   0x6 LB: > { %s1022_s16 = sadd.s32 4294967295, %s971_s15   ;;  %s544_s17 = sadd.s32 4294967294, %s971_s15   ;;  %s971_s15 = sphi %s1007_s15, %s1277_s15   ;;  %s967_s14 = sphi %s1005_s14, %s1276_s14   ;;  %s963_s13 = sphi %s1003_s13, %s1275_s13   ;;  %s959_s12 = sphi %s1001_s12, %s1274_s12  }
   0x7   : > { %p40_p0 = scmp.ne.s32.totalorder %s963_s13, %s959_s12  ;;  %p1258_p1 = scmp.eq.s32.totalorder %s1022_s16, 0 }
   0x8   : > { %p112_p3 = scmp.eq.s32.totalorder %s544_s17, 1  ;;  %p545_p5 = scmp.ge.s32.totalorder %s971_s15, 1 }
   0x9   : > { %p1031_p4 = por %p1258_p1, %p40_p0  ;;  %p119_p7 = scmp.lt.s32.totalorder %s971_s15, 3 }
   0xa   : > { %p1036_p6 = por %p112_p3, %p40_p0  ;;  %s973_s21 = smov [#allocation5]  }
   0xb   : > { %s1261_s18 = scalar_select %p1031_p4, 1, 0 }
   0xc   : > { %s1262_s19 = scalar_select %p1036_p6, 1, 0 }
   0xd   : > { %p1041_p8 = pnand %p545_p5, %p119_p7  ;;  %s131_s22 = sshll.u32 %s973_s21, 4  ;;  %s1045_s22 = int_to_ptr.vmem [resolvable:$true] %s131_s22 }
   0xe   : > { %s974_s24 = smov [#allocation7]   ;;  %s815_s28 = scalar_lea.hbm %s1255_s1, 2048 }
   0xf   : > { %p756_p9 = pneg %p1041_p8  ;;  %s144_s25 = sshll.u32 %s974_s24, 4  ;;  %s1056_s25 = int_to_ptr.vmem [resolvable:$true] %s144_s25 }
  0x10   : > { %p816_p12 = scmp.ne.s32.totalorder %s1255_s1, %s815_s28  ;;  %p822_p5 = scmp.lt.u32.totalorder %s815_s28, %s1255_s1 }
  0x11   : > { %p1052_p11 = pnand %p756_p9, %p1258_p1 }
  0x13   : > { %p817_p13 = pneg %p1052_p11 }
  0x15   : > { %p818_p0 = pnand %p817_p13, %p816_p12 }
  0x17   : > { %p819_p3 = pneg %p818_p0 }
  0x19   : > { %p824_p7 = pnand %p822_p5, %p819_p3 }
  0x1b   : > { %827 = shalt.err (!%p824_p7)
}
  0x1c   : > { %s828_s6 = scalar_lea.vmem %s1045_s22, 2048  ;;  %p836_p2 = scmp.lt.s32.totalorder %s1045_s22, %s1045_s22 }
  0x1d   : > { %p829_p9 = scmp.ne.s32.totalorder %s1045_s22, %s828_s6  ;;  %p837_p12 = scmp.lt.s32.totalorder %s828_s6, %s828_s6 }
  0x1f   : > { %p831_p10 = pnand %p829_p9, %p817_p13  ;;  %p838_p0 = por %p837_p12, %p836_p2 }
  0x21   : > { %p832_p1 = pneg %p831_p10 }
  0x23   : > { %p839_p6 = pnand %p838_p0, %p832_p1 }
  0x25   : > { %842 = shalt.err (!%p839_p6)
}
  0x26   : > { %s975_s7 = smov 128   ;;  %s976_s8 = smov 8  }
  0x27   : > { %759 = dma.hbm_to_vmem [thread:$0]  (!%p1052_p11), %s1255_s1, 2048, %s1045_s22, [#allocation6], %s975_s7, %s975_s7, %s976_s8  }
  0x28   : > { %s843_s21 = scalar_lea.hbm %s1256_s2, 2048 }
  0x29   : > { %p844_p1 = scmp.ne.s32.totalorder %s1256_s2, %s843_s21  ;;  %p850_p10 = scmp.lt.u32.totalorder %s843_s21, %s1256_s2 }
  0x2b   : > { %p846_p2 = pnand %p844_p1, %p817_p13 }
  0x2d   : > { %p847_p6 = pneg %p846_p2 }
  0x2f   : > { %p852_p3 = pnand %p850_p10, %p847_p6 }
  0x31   : > { %855 = shalt.err (!%p852_p3)
}
  0x32   : > { %s856_s22 = scalar_lea.vmem %s1056_s25, 2048  ;;  %p864_p12 = scmp.lt.s32.totalorder %s1056_s25, %s1056_s25 }
  0x33   : > { %p857_p5 = scmp.ne.s32.totalorder %s1056_s25, %s856_s22  ;;  %p865_p0 = scmp.lt.s32.totalorder %s856_s22, %s856_s22 }
  0x35   : > { %p859_p7 = pnand %p857_p5, %p817_p13  ;;  %p866_p1 = por %p865_p0, %p864_p12 }
  0x37   : > { %p860_p9 = pneg %p859_p7 }
  0x39   : > { %p867_p2 = pnand %p866_p1, %p860_p9 }
  0x3b   : > { %870 = shalt.err (!%p867_p2)
}
  0x3c   : > { %762 = dma.hbm_to_vmem [thread:$0]  (!%p1052_p11), %s1256_s2, 2048, %s1056_s25, [#allocation6], %s975_s7, %s975_s7, %s976_s8  }
  0x3d   : > { %s1117_s23 = sadd.s32 1, %s971_s15   ;;  %s27_s4 = sadd.s32 1, %s967_s14 }
  0x3e   : > { %s24_s5 = ssub.s32 %s971_s15, %s1117_s23  ;;  %p34_p13 = scmp.ne.s32.totalorder %s967_s14, %s963_s13 }
  0x3f   : > { %p25_p6 = scmp.eq.s32.totalorder %s24_s5, 0  ;;  %p35_p10 = scmp.eq.s32.totalorder %s971_s15, 0 }
  0x40   : > { %p1265_p3 = scmp.eq.s32.totalorder %s1022_s16, 1  ;;  %p773_p7 = scmp.lt.s32.totalorder %s971_s15, 2 }
  0x41   : > { %s1133_s9 = scalar_select %p25_p6, %s967_s14, %s27_s4  }
  0x42   : > { %p1127_p5 = por %p1265_p3, %p34_p13  ;;  %p36_p9 = por %p35_p10, %p34_p13 }
  0x43   : > { %s158_s10 = sand.u32 1, %s967_s14   ;;  %s562_s25 = sshll.u32 %s971_s15, 9 }
  0x44   : > { %s1266_s6 = scalar_select %p1127_p5, 1, 0 }
  0x45   : > { %s549_s11 = sshll.u32 %s158_s10, 5  ;;  %s1140_s24 = scalar_lea.hbm %s1254_s0, %s562_s25 }
  0x46   : > { %s162_s26 = scalar_lea.vmem [#allocation2], %s549_s11  ;;  %p1144_p11 = pnand %p773_p7, %p36_p9 }
  0x47   : > { %s169_s27 = sshll.u32 %s162_s26, 4  ;;  %s1148_s22 = scalar_lea.sflag [#allocation3], %s158_s10  ;;  %s1142_s27 = int_to_ptr.vmem [resolvable:$true] %s169_s27 }
  0x48   : > { %s871_s29 = scalar_lea.hbm %s1140_s24, 512  ;;  %p873_p0 = pneg %p1144_p11 }
  0x49   : > { %p872_p12 = scmp.ne.s32.totalorder %s1140_s24, %s871_s29  ;;  %s876_s5 = scalar_lea.hbm %s1254_s0, 1024 }
  0x4a   : > { %p877_p13 = scmp.lt.u32.totalorder %s1140_s24, %s1254_s0  ;;  %p878_p6 = scmp.lt.u32.totalorder %s876_s5, %s871_s29 }
  0x4b   : > { %p874_p1 = pnand %p873_p0, %p872_p12  ;;  %p880_p3 = scmp.lt.u32.totalorder %s871_s29, %s1140_s24 }
  0x4c   : > { %p879_p10 = por %p878_p6, %p877_p13 }
  0x4d   : > { %p875_p2 = pneg %p874_p1 }
  0x4e   : > { %p881_p7 = por %p880_p3, %p879_p10 }
  0x50   : > { %p882_p9 = pnand %p881_p7, %p875_p2 }
  0x52   : > { %885 = shalt.err (!%p882_p9)
}
  0x53   : > { %s886_s10 = scalar_lea.vmem %s1142_s27, 512  ;;  %s977_s17 = smov [#allocation2]  }
  0x54   : > { %p887_p12 = scmp.ne.s32.totalorder %s1142_s27, %s886_s10  ;;  %s891_s21 = sshll.u32 %s977_s17, 4  ;;  %s892_s21 = int_to_ptr.vmem [resolvable:$false] %s891_s21 }
  0x55   : > { %s893_s26 = scalar_lea.vmem %s892_s21, 1024  ;;  %p894_p4 = scmp.lt.s32.totalorder %s1142_s27, %s892_s21 }
  0x56   : > { %p889_p1 = pnand %p887_p12, %p873_p0  ;;  %p895_p13 = scmp.lt.s32.totalorder %s893_s26, %s886_s10 }
  0x58   : > { %p890_p5 = pneg %p889_p1  ;;  %p896_p6 = por %p895_p13, %p894_p4 }
  0x5a   : > { %p897_p10 = pnand %p896_p6, %p890_p5 }
  0x5c   : > { %900 = shalt.err (!%p897_p10)
}
  0x5d   : > { %766 = dma.hbm_to_vmem [thread:$0]  (!%p1144_p11), %s1140_s24, 512, %s1142_s27, %s1148_s22, %s975_s7, %s975_s7, %s976_s8  }
  0x5e   : > { %181 = sbr.rel (%p1041_p8) target bundleno = 590 (0x24e), region = 32  ;;  %s1182_s29 = sand.u32 (!%p1041_p8), 1, %s963_s13  }
  0x5f   : > { %s553_s30 = sshll.u32 (!%p1041_p8), %s1182_s29, 5  ;;  %s184_s4 = scalar_lea.sflag (!%p1041_p8), [#allocation3], %s1182_s29 }
  0x60   : > { %s1188_s28 = scalar_lea.vmem (!%p1041_p8), [#allocation2], %s553_s30  ;;  %p1268_p4 = scmp.ne.s32.totalorder (!%p1041_p8), %s1261_s18, 0 }
  0x65   : > { %946 = dma.done.wait (%p1268_p4), %s184_s4, 512  }
  0x66   : > { %948 = vsyncadd (%p1268_p4), %s184_s4, 4294966784  ;;  %p1269_p5 = scmp.eq.s32.totalorder %s1022_s16, 0 }
  0x68   : > { %950 = dma.done.wait (%p1269_p5), [#allocation6], 4096   ;;  %p1270_p8 = pmov %p1269_p5 }
  0x69   : > { %v224_v0 = vld [vmem:[#allocation5] sm:$0xff]  ;;  %v225_v1 = vld [vmem:[#allocation5 + $0x8] sm:$0xff]  ;;  %v226_v2 = vld [vmem:[#allocation5 + $0x10] sm:$0xff]  ;;  %s217_s18 = scalar_lea.vmem [#allocation8], %s553_s30  ;;  %s563_s7 = sshll.u32 %s1022_s16, 9 }
  0x6a   : > { %952 = vsyncadd (%p1270_p8), [#allocation6], 4294963200  ;;  %v680_v3 = vpack.c.bf16 %v225_v1, %v224_v0  ;;  %v227_v4 = vld [vmem:[#allocation5 + $0x18] sm:$0xff]  ;;  %v228_v6 = vld [vmem:[#allocation5 + $0x20] sm:$0xff]  ;;  %s452_s20 = sshll.u32 %s217_s18, 4  ;;  %s1210_s27 = scalar_lea.hbm %s1257_s3, %s563_s7  ;;  %s1205_s20 = int_to_ptr.vmem [resolvable:$true] %s452_s20 }
  0x6b   : > { %v684_v5 = vpack.c.bf16 %v227_v4, %v226_v2  ;;  %v229_v7 = vld [vmem:[#allocation5 + $0x28] sm:$0xff]  ;;  %v220_v9 = vld [vmem:[%s1188_s28] sm:$0xff]  ;;  %v230_v10 = vld [vmem:[#allocation5 + $0x30] sm:$0xff]  ;;  %s439_s22 = scalar_lea.sflag [#allocation4], %s1182_s29  ;;  %s901_s16 = scalar_lea.vmem %s1205_s20, 512 }
  0x6c   : > { %681 = vmatprep.subr.bf16.mxu0 %v680_v3  ;;  %v688_v8 = vpack.c.bf16 %v229_v7, %v228_v6  ;;  %v231_v11 = vld [vmem:[#allocation5 + $0x38] sm:$0xff]  ;;  %636 = vmatprep.mubr.f32.mxu0 %v220_v9  ;;  %v329_v12 = vld [vmem:[#allocation7] sm:$0xff]  ;;  %v330_v13 = vld [vmem:[#allocation7 + $0x8] sm:$0xff]  ;;  %p902_p11 = scmp.ne.s32.totalorder %s1205_s20, %s901_s16  ;;  %p1271_p0 = scmp.ne.s32.totalorder %s1266_s6, 0 }
  0x6d   : > { %683 = vmatpush3.bf16.msra.mxu0 %v680_v3  ;;  %v331_v14 = vld [vmem:[#allocation7 + $0x10] sm:$0xff]  ;;  %v332_v15 = vld [vmem:[#allocation7 + $0x18] sm:$0xff]  ;;  %v712_v16 = vpack.c.bf16 %v330_v13, %v329_v12  ;;  %v692_v18 = vpack.c.bf16 %v231_v11, %v230_v10  ;;  %v333_v19 = vld [vmem:[#allocation7 + $0x20] sm:$0xff]  ;;  %s978_s5 = smov [#allocation8]  }
  0x6e   : > { %685 = vmatprep.subr.bf16.mxu0 %v684_v5  ;;  %v716_v17 = vpack.c.bf16 %v332_v15, %v331_v14  ;;  %v334_v20 = vld [vmem:[#allocation7 + $0x28] sm:$0xff]  ;;  %v232_v21 = vld [vmem:[#allocation5 + $0x40] sm:$0xff]  ;;  %v335_v25 = vld [vmem:[#allocation7 + $0x30] sm:$0xff]  ;;  %p903_p2 = pnand %p902_p11, %p1271_p0  ;;  %s905_s11 = sshll.u32 %s978_s5, 4  ;;  %s906_s11 = int_to_ptr.vmem [resolvable:$false] %s905_s11 }
  0x6f   : > { %v233_v22 = vld [vmem:[#allocation5 + $0x48] sm:$0xff]  ;;  %713 = vmatprep.subr.bf16.mxu1 %v712_v16  ;;  %v720_v23 = vpack.c.bf16 %v334_v20, %v333_v19  ;;  %v336_v26 = vld [vmem:[#allocation7 + $0x38] sm:$0xff]  ;;  %v234_v27 = vld [vmem:[#allocation5 + $0x50] sm:$0xff]  ;;  %s907_s25 = scalar_lea.vmem %s906_s11, 1024  ;;  %p908_p7 = scmp.lt.s32.totalorder %s1205_s20, %s906_s11 }
  0x70   : > { %715 = vmatpush3.bf16.msra.mxu1 %v712_v16  ;;  %v696_v24 = vpack.c.bf16 %v233_v22, %v232_v21  ;;  %v235_v28 = vld [vmem:[#allocation5 + $0x58] sm:$0xff]  ;;  %v724_v29 = vpack.c.bf16 %v336_v26, %v335_v25  ;;  %v337_v31 = vld [vmem:[#allocation7 + $0x40] sm:$0xff]  ;;  %v338_v32 = vld [vmem:[#allocation7 + $0x48] sm:$0xff]  ;;  %p904_p3 = pneg %p903_p2  ;;  %p909_p9 = scmp.lt.s32.totalorder %s907_s25, %s901_s16 }
  0x71   : > { %687 = vmatpush3.bf16.msra.mxu0 %v684_v5  ;;  %717 = vmatprep.subr.bf16.mxu1 %v716_v17  ;;  %v700_v30 = vpack.c.bf16 %v235_v28, %v234_v27  ;;  %v236_v33 = vld [vmem:[#allocation5 + $0x60] sm:$0xff]  ;;  %v237_v34 = vld [vmem:[#allocation5 + $0x68] sm:$0xff]  ;;  %v728_v35 = vpack.c.bf16 %v338_v32, %v337_v31  ;;  %v339_v37 = vld [vmem:[#allocation7 + $0x50] sm:$0xff] }
  0x72   : > { %689 = vmatprep.subr.bf16.mxu0 %v688_v8  ;;  %v704_v36 = vpack.c.bf16 %v237_v34, %v236_v33  ;;  %v340_v38 = vld [vmem:[#allocation7 + $0x58] sm:$0xff]  ;;  %v238_v39 = vld [vmem:[#allocation5 + $0x70] sm:$0xff]  ;;  %v341_v43 = vld [vmem:[#allocation7 + $0x60] sm:$0xff]  ;;  %p910_p12 = por %p909_p9, %p908_p7 }
  0x73   : > { %v239_v40 = vld [vmem:[#allocation5 + $0x78] sm:$0xff]  ;;  %v732_v41 = vpack.c.bf16 %v340_v38, %v339_v37  ;;  %v342_v44 = vld [vmem:[#allocation7 + $0x68] sm:$0xff]  ;;  %v222_v47 = vld [vmem:[%s1188_s28 + $0x10] sm:$0xff] }
  0x74   : > { %719 = vmatpush3.bf16.msra.mxu1 %v716_v17  ;;  %v708_v42 = vpack.c.bf16 %v239_v40, %v238_v39  ;;  %v736_v45 = vpack.c.bf16 %v342_v44, %v341_v43  ;;  %v221_v46 = vld [vmem:[%s1188_s28 + $0x8] sm:$0xff]  ;;  %v223_v48 = vld [vmem:[%s1188_s28 + $0x18] sm:$0xff]  ;;  %v343_v49 = vld [vmem:[#allocation7 + $0x70] sm:$0xff]  ;;  %p911_p1 = pnand %p910_p12, %p904_p3 }
  0x75   : > { %691 = vmatpush3.bf16.msra.mxu0 %v688_v8  ;;  %721 = vmatprep.subr.bf16.mxu1 %v720_v23  ;;  %v344_v50 = vld [vmem:[#allocation7 + $0x78] sm:$0xff] }
  0x76   : > { %693 = vmatprep.subr.bf16.mxu0 %v692_v18  ;;  %v740_v51 = vpack.c.bf16 %v344_v50, %v343_v49 }
  0x78   : > { %723 = vmatpush3.bf16.msra.mxu1 %v720_v23 }
  0x79   : > { %695 = vmatpush3.bf16.msra.mxu0 %v692_v18  ;;  %725 = vmatprep.subr.bf16.mxu1 %v724_v29 }
  0x7a   : > { %697 = vmatprep.subr.bf16.mxu0 %v696_v24 }
  0x7c   : > { %727 = vmatpush3.bf16.msra.mxu1 %v724_v29 }
  0x7d   : > { %699 = vmatpush3.bf16.msra.mxu0 %v696_v24  ;;  %729 = vmatprep.subr.bf16.mxu1 %v728_v35 }
  0x7e   : > { %701 = vmatprep.subr.bf16.mxu0 %v700_v30 }
  0x80   : > { %731 = vmatpush3.bf16.msra.mxu1 %v728_v35 }
  0x81   : > { %703 = vmatpush3.bf16.msra.mxu0 %v700_v30  ;;  %733 = vmatprep.subr.bf16.mxu1 %v732_v41 }
  0x82   : > { %705 = vmatprep.subr.bf16.mxu0 %v704_v36 }
  0x84   : > { %735 = vmatpush3.bf16.msra.mxu1 %v732_v41 }
  0x85   : > { %707 = vmatpush3.bf16.msra.mxu0 %v704_v36  ;;  %737 = vmatprep.subr.bf16.mxu1 %v736_v45 }
  0x86   : > { %709 = vmatprep.subr.bf16.mxu0 %v708_v42 }
  0x88   : > { %739 = vmatpush3.bf16.msra.mxu1 %v736_v45 }
  0x89   : > { %711 = vmatpush3.bf16.msra.mxu0 %v708_v42  ;;  %741 = vmatprep.subr.bf16.mxu1 %v740_v51 }
  0x8c   : > { %637 = vmatmul.mubr.f32.vlgmr.msra.gmra.mrb[0].mxu0 %v221_v46  ;;  %743 = vmatpush3.bf16.msra.mxu1 %v740_v51 }
  0x8d   : > { %639 = vmatprep.mubr.f32.mxu0 %v222_v47 }
  0x90   : > { %640 = vmatmul.mubr.f32.gmra.mrb[2].mxu0 %v223_v48 }
 0x15f   : > { %v638_v52 = vpop.f32.mrb[0].mxu0 }
 0x160   : > { %v306_v53 = vpop.f32.mrb[1].mxu0  ;;  %v326_v55 = vmax.f32 %v638_v52, 0.0 }
 0x161   : > { %v325_v54 = vmax.f32 %v306_v53, 0.0 }
 0x163   : > { %v641_v56 = vpop.f32.mrb[2].mxu0  ;;  %674 = vmatprep.mubr.f32.mxu1 %v325_v54 }
 0x164   : > { %v316_v57 = vpop.f32.mrb[3].mxu0  ;;  %675 = vmatmul.mubr.f32.vlgmr.msra.gmra.mrb[0].mxu1 %v326_v55  ;;  %v328_v59 = vmax.f32 %v641_v56, 0.0 }
 0x165   : > { %v327_v58 = vmax.f32 %v316_v57, 0.0 }
 0x167   : > { %677 = vmatprep.mubr.f32.mxu1 %v327_v58 }
 0x168   : > { %678 = vmatmul.mubr.f32.gmra.mrb[2].mxu1 %v328_v59 }
 0x237   : > { %v676_v60 = vpop.f32.mrb[0].mxu1 }
 0x238   : > { %v431_v61 = vmax.f32 %v676_v60, 0.0  ;;  %v411_v62 = vpop.f32.mrb[1].mxu1 }
 0x239   : > { %v430_v63 = vmax.f32 %v411_v62, 0.0 }
 0x23a   : > { %435 = vst [vmem:[%s217_s18 + $0x8] sm:$0xff] %v431_v61 }
 0x23b   : > { %434 = vst [vmem:[%s217_s18] sm:$0xff] %v430_v63  ;;  %v679_v0 = vpop.f32.mrb[2].mxu1 }
 0x23c   : > { %v433_v1 = vmax.f32 %v679_v0, 0.0  ;;  %v421_v2 = vpop.f32.mrb[3].mxu1 }
 0x23d   : > { %v432_v3 = vmax.f32 %v421_v2, 0.0 }
 0x23e   : > { %437 = vst [vmem:[%s217_s18 + $0x18] sm:$0xff] %v433_v1 }
 0x23f   : > { %436 = vst [vmem:[%s217_s18 + $0x10] sm:$0xff] %v432_v3 }
 0x240   : > { %914 = shalt.err (!%p911_p1)
}
 0x241   : > { %s915_s10 = scalar_lea.hbm %s1210_s27, 512  ;;  %s919_s26 = scalar_lea.hbm %s1257_s3, 1024 }
 0x242   : > { %p916_p13 = scmp.ne.s32.totalorder %s1210_s27, %s915_s10  ;;  %p920_p4 = scmp.lt.u32.totalorder %s1210_s27, %s1257_s3 }
 0x243   : > { %p921_p5 = scmp.lt.u32.totalorder %s919_s26, %s915_s10  ;;  %p923_p11 = scmp.lt.u32.totalorder %s915_s10, %s1210_s27 }
 0x244   : > { %p917_p6 = pnand %p916_p13, %p1271_p0 }
 0x245   : > { %p922_p8 = por %p921_p5, %p920_p4 }
 0x246   : > { %p918_p10 = pneg %p917_p6 }
 0x247   : > { %p924_p2 = por %p923_p11, %p922_p8 }
 0x249   : > { %p925_p3 = pnand %p924_p2, %p918_p10 }
 0x24b   : > { %928 = shalt.err (!%p925_p3)
}
 0x24c   : > { %s979_s28 = smov 128   ;;  %s980_s18 = smov 8  }
 0x24d   : > { %754 = dma.vmem_to_hbm [thread:$0]  (%p1271_p0), %s1205_s20, 512, %s1210_s27, %s439_s22, %s979_s28, %s979_s28, %s980_s18  }
 0x24e PF: > { %s467_s7 = sand.u32 1, %s959_s12   ;;  %p1272_p7 = scmp.ne.s32.totalorder %s1262_s19, 0 }
 0x24f   : > { %p1273_p9 = scmp.ge.s32.totalorder %s971_s15, 2  ;;  %s468_s8 = scalar_lea.sflag [#allocation4], %s467_s7 }
 0x251   : > { %p768_p12 = pnand %p1273_p9, %p1272_p7 }
 0x253   : > { %954 = dma.done.wait (!%p768_p12), %s468_s8, 512  }
 0x254   : > { %956 = vsyncadd (!%p768_p12), %s468_s8, 4294966784  ;;  %p17_p1 = scmp.ge.s32.totalorder %s1117_s23, 4   ;;  %s1274_s12 = smov %s963_s13 }
 0x255   : > { %s1275_s13 = smov %s967_s14  ;;  %s1276_s14 = smov %s1133_s9 }
 0x256   : > { %s1277_s15 = smov %s1117_s23  ;;  %19 = sbr.rel (!%p17_p1) target bundleno = 6 (0x6), region = 85 }
 0x25d   :  { %473 = vsyncpa [#allocation3], 1 }
 0x25e   :  { %475 = vsyncpa [#allocation3 + $0x1], 1 }
 0x25f   :  { %476 = vsyncpa [#allocation6], 1 }
 0x260   :  { %477 = vsyncpa [#allocation4], 1 }
 0x261   :  { %479 = vsyncpa [#allocation4 + $0x1], 1 }

</bundles_post_ra>
